<compile_context>
chip_gen: v7x
topology: tpu7x:2x2x1
jax: 0.10.0
libtpu: 0.0.40
codegen_flags: <defaults>
</compile_context>

<pallas_src>
import jax
import jax.numpy as jnp
from jax.experimental import pallas as pl
from jax.experimental.pallas import tpu as pltpu

_IN = 28 * 28
_HID = 100
_HID_PAD = 128   # lane-pad hidden dim to one full 128-lane vreg
_OUT = 10


def _full_mlp_kernel(x_ref, w1_ref, b1_ref, w2_ref, b2_ref, o_ref):
    # x_ref:  (TM, 784)        w1_ref: (784, 128)   b1_ref: (1, 128)
    # w2_ref: (128, 10)        b2_ref: (1, 10)      o_ref:  (TM, 10)
    x = x_ref[...]
    w1 = w1_ref[...]
    w2 = w2_ref[...]

    # Layer 1: Linear(784 -> 100, padded to 128) + ReLU  (MXU matmul, f32 accumulate)
    h = jnp.dot(x, w1, preferred_element_type=jnp.float32) + b1_ref[...]
    h = jnp.maximum(h, 0.0)

    # Layer 2: Linear(100 padded to 128 -> 10); padded rows of w2 are zero -> no effect.
    logits = jnp.dot(h, w2, preferred_element_type=jnp.float32) + b2_ref[...]

    # log_softmax along dim=1 (numerically stable); output axis is the true 10 classes,
    # so no masking is needed.
    m = jnp.max(logits, axis=1, keepdims=True)
    shifted = logits - m
    lse = jnp.log(jnp.sum(jnp.exp(shifted), axis=1, keepdims=True))
    o_ref[...] = (shifted - lse).astype(o_ref.dtype)


def full_forward(x, w1, b1, w2, b2, *, tm=512):
    """x: any shape whose trailing dims flatten to 784 per row (PyTorch x.view(-1, 784)).
    w1: (784, 100), b1: (100,), w2: (100, 10), b2: (10,)  -- stored as (in, out)."""
    x2d = x.reshape(-1, _IN).astype(jnp.float32)
    B = x2d.shape[0]

    # --- lane-pad hidden dim 100 -> 128 (zeros are inert: relu(0)=0, 0-rows of w2 add 0) ---
    w1p = jnp.zeros((_IN, _HID_PAD), jnp.float32).at[:, :_HID].set(w1.astype(jnp.float32))
    b1p = jnp.zeros((1, _HID_PAD), jnp.float32).at[:, :_HID].set(
        b1.reshape(1, -1).astype(jnp.float32))
    w2p = jnp.zeros((_HID_PAD, _OUT), jnp.float32).at[:_HID, :].set(w2.astype(jnp.float32))
    b2p = b2.reshape(1, _OUT).astype(jnp.float32)

    # --- pick a batch tile; pad B up to a multiple of it so every tile is identical
    #     (unmasked stores, no remainder-tile garbage) ---
    if B >= tm:
        TM = tm
    else:
        TM = max(8, ((B + 7) // 8) * 8)   # sublane-aligned tile for small batches
    Bp = pl.cdiv(B, TM) * TM
    if Bp != B:
        x2d = jnp.pad(x2d, ((0, Bp - B), (0, 0)))

    out = pl.pallas_call(
        _full_mlp_kernel,
        out_shape=jax.ShapeDtypeStruct((Bp, _OUT), jnp.float32),
        grid_spec=pltpu.PrefetchScalarGridSpec(
            num_scalar_prefetch=0,
            grid=(Bp // TM,),
            in_specs=[
                pl.BlockSpec((TM, _IN), lambda i: (i, 0)),        # x: tiled over batch
                pl.BlockSpec((_IN, _HID_PAD), lambda i: (0, 0)),  # weights VMEM-resident
                pl.BlockSpec((1, _HID_PAD), lambda i: (0, 0)),
                pl.BlockSpec((_HID_PAD, _OUT), lambda i: (0, 0)),
                pl.BlockSpec((1, _OUT), lambda i: (0, 0)),
            ],
            out_specs=pl.BlockSpec((TM, _OUT), lambda i: (i, 0)),
        ),
        compiler_params=pltpu.CompilerParams(
            # batch tiles are independent -> let Mosaic shard them across TCs (2x on v7x)
            dimension_semantics=("parallel",),
        ),
    )(x2d, w1p, b1p, w2p, b2p)

    return out[:B]


def _reference_forward(x, w1, b1, w2, b2):
    x2d = x.reshape(-1, _IN)
    h = jnp.maximum(x2d @ w1 + b1, 0.0)
    logits = h @ w2 + b2
    return jax.nn.log_softmax(logits, axis=1)


if __name__ == "__main__":
    key = jax.random.PRNGKey(0)
    k_x, k_w1, k_b1, k_w2, k_b2 = jax.random.split(key, 5)

    B = 2
    # Input mimicking an MNIST-style batch (B, 1, 28, 28) -> flattened inside forward.
    x = jax.random.normal(k_x, (B, 1, 28, 28), dtype=jnp.float32)

    # Deterministic parameter init (PyTorch Linear-style uniform bounds), stored as (in, out).
    bound1 = 1.0 / (_IN) ** 0.5
    w1 = jax.random.uniform(k_w1, (_IN, _HID), jnp.float32, -bound1, bound1)
    b1 = jax.random.uniform(k_b1, (_HID,), jnp.float32, -bound1, bound1)
    bound2 = 1.0 / _HID ** 0.5
    w2 = jax.random.uniform(k_w2, (_HID, _OUT), jnp.float32, -bound2, bound2)
    b2 = jax.random.uniform(k_b2, (_OUT,), jnp.float32, -bound2, bound2)

    out = full_forward(x, w1, b1, w2, b2)
    out = jax.block_until_ready(out)

    ref = _reference_forward(x, w1, b1, w2, b2)
    assert out.shape == (B, _OUT), out.shape
    assert jnp.allclose(out, ref, atol=1e-5, rtol=1e-5), "mismatch vs reference"
    # log_softmax rows should sum (in prob space) to 1
    assert jnp.allclose(jnp.sum(jnp.exp(out), axis=1), 1.0, atol=1e-5)

    print("KERNEL_OK")
</pallas_src>

<mosaic_0001>
module attributes {stable_mosaic.version = 11 : i64} {
  func.func @_full_mlp_kernel(%arg0: i32, %arg1: memref<8x784xf32, #tpu.memory_space<vmem>>, %arg2: memref<784x128xf32, #tpu.memory_space<vmem>>, %arg3: memref<1x128xf32, #tpu.memory_space<vmem>>, %arg4: memref<128x10xf32, #tpu.memory_space<vmem>>, %arg5: memref<1x10xf32, #tpu.memory_space<vmem>>, %arg6: memref<8x10xf32, #tpu.memory_space<vmem>>) attributes {dimension_semantics = [#tpu.dimension_semantics<parallel>], iteration_bounds = array<i64: 1>, scalar_prefetch = 0 : i64, scratch_operands = 0 : i64, tpu.core_type = #tpu.core_type<tc>, window_params = [{transform_indices = @transform_0, window_bounds = array<i64: 8, 784>}, {pipeline_mode = #tpu.pipeline_mode<synchronous>, transform_indices = @transform_1, window_bounds = array<i64: 784, 128>}, {pipeline_mode = #tpu.pipeline_mode<synchronous>, transform_indices = @transform_2, window_bounds = array<i64: 1, 128>}, {pipeline_mode = #tpu.pipeline_mode<synchronous>, transform_indices = @transform_3, window_bounds = array<i64: 128, 10>}, {pipeline_mode = #tpu.pipeline_mode<synchronous>, transform_indices = @transform_4, window_bounds = array<i64: 1, 10>}, {transform_indices = @transform_5, window_bounds = array<i64: 8, 10>}]} {
    %c0 = arith.constant 0 : index
    %c0_0 = arith.constant 0 : index
    %0 = vector.load %arg1[%c0, %c0_0] : memref<8x784xf32, #tpu.memory_space<vmem>>, vector<8x784xf32>
    %c0_1 = arith.constant 0 : index
    %c0_2 = arith.constant 0 : index
    %1 = vector.load %arg2[%c0_1, %c0_2] : memref<784x128xf32, #tpu.memory_space<vmem>>, vector<784x128xf32>
    %c0_3 = arith.constant 0 : index
    %c0_4 = arith.constant 0 : index
    %2 = vector.load %arg4[%c0_3, %c0_4] : memref<128x10xf32, #tpu.memory_space<vmem>>, vector<128x10xf32>
    %cst = arith.constant dense<0.000000e+00> : vector<8x128xf32>
    %3 = tpu.matmul %0, %1, %cst {dimension_numbers = #tpu.dot_dimension_numbers<[1], [0], [0], [1], [0, 0, 1, 1], [], []>} : vector<8x784xf32>, vector<784x128xf32>, vector<8x128xf32> -> vector<8x128xf32>
    %c0_5 = arith.constant 0 : index
    %c0_6 = arith.constant 0 : index
    %4 = vector.load %arg3[%c0_5, %c0_6] : memref<1x128xf32, #tpu.memory_space<vmem>>, vector<1x128xf32>
    %5 = vector.broadcast %4 : vector<1x128xf32> to vector<8x128xf32>
    %6 = arith.addf %3, %5 : vector<8x128xf32>
    %cst_7 = arith.constant 0.000000e+00 : f32
    %7 = vector.broadcast %cst_7 : f32 to vector<8x128xf32>
    %8 = arith.maximumf %6, %7 : vector<8x128xf32>
    %cst_8 = arith.constant dense<0.000000e+00> : vector<8x10xf32>
    %9 = tpu.matmul %8, %2, %cst_8 {dimension_numbers = #tpu.dot_dimension_numbers<[1], [0], [0], [1], [0, 0, 1, 1], [], []>} : vector<8x128xf32>, vector<128x10xf32>, vector<8x10xf32> -> vector<8x10xf32>
    %c0_9 = arith.constant 0 : index
    %c0_10 = arith.constant 0 : index
    %10 = vector.load %arg5[%c0_9, %c0_10] : memref<1x10xf32, #tpu.memory_space<vmem>>, vector<1x10xf32>
    %11 = vector.broadcast %10 : vector<1x10xf32> to vector<8x10xf32>
    %12 = arith.addf %9, %11 : vector<8x10xf32>
    %cst_11 = arith.constant dense<0xFF800000> : vector<8xf32>
    %13 = vector.multi_reduction <maximumf>, %12, %cst_11 [1] : vector<8x10xf32> to vector<8xf32>
    %14 = vector.shape_cast %13 : vector<8xf32> to vector<8x1xf32>
    %15 = vector.broadcast %14 : vector<8x1xf32> to vector<8x10xf32>
    %16 = arith.subf %12, %15 : vector<8x10xf32>
    %17 = math.exp %16 : vector<8x10xf32>
    %cst_12 = arith.constant dense<0.000000e+00> : vector<8xf32>
    %18 = vector.multi_reduction <add>, %17, %cst_12 [1] : vector<8x10xf32> to vector<8xf32>
    %19 = vector.shape_cast %18 : vector<8xf32> to vector<8x1xf32>
    %20 = math.log %19 : vector<8x1xf32>
    %21 = vector.broadcast %20 : vector<8x1xf32> to vector<8x10xf32>
    %22 = arith.subf %16, %21 : vector<8x10xf32>
    %c0_13 = arith.constant 0 : index
    %c0_14 = arith.constant 0 : index
    %23 = vector.load %arg6[%c0_13, %c0_14] : memref<8x10xf32, #tpu.memory_space<vmem>>, vector<8x10xf32>
    tpu.vector_store %arg6[%c0_13, %c0_14], %22 {strides = array<i32>} : memref<8x10xf32, #tpu.memory_space<vmem>>, vector<8x10xf32>,
    return
  }
  func.func @transform_0(%arg0: i32) -> (i32, i32) {
    %c0_i32 = arith.constant 0 : i32
    %c0_i32_0 = arith.constant 0 : i32
    return %arg0, %c0_i32 : i32, i32
  }
  func.func @transform_1(%arg0: i32) -> (i32, i32) {
    %c0_i32 = arith.constant 0 : i32
    %c0_i32_0 = arith.constant 0 : i32
    %c0_i32_1 = arith.constant 0 : i32
    return %c0_i32, %c0_i32_0 : i32, i32
  }
  func.func @transform_2(%arg0: i32) -> (i32, i32) {
    %c0_i32 = arith.constant 0 : i32
    %c0_i32_0 = arith.constant 0 : i32
    %c0_i32_1 = arith.constant 0 : i32
    return %c0_i32, %c0_i32_0 : i32, i32
  }
  func.func @transform_3(%arg0: i32) -> (i32, i32) {
    %c0_i32 = arith.constant 0 : i32
    %c0_i32_0 = arith.constant 0 : i32
    %c0_i32_1 = arith.constant 0 : i32
    return %c0_i32, %c0_i32_0 : i32, i32
  }
  func.func @transform_4(%arg0: i32) -> (i32, i32) {
    %c0_i32 = arith.constant 0 : i32
    %c0_i32_0 = arith.constant 0 : i32
    %c0_i32_1 = arith.constant 0 : i32
    return %c0_i32, %c0_i32_0 : i32, i32
  }
  func.func @transform_5(%arg0: i32) -> (i32, i32) {
    %c0_i32 = arith.constant 0 : i32
    %c0_i32_0 = arith.constant 0 : i32
    return %arg0, %c0_i32 : i32, i32
  }
}

</mosaic_0001>

<bundles_post_ra>
// kernel: tpu_custom_call.1
= control target key start
LH: loop header
LB: loop body
LE: loop exit
PB: predicated region body
PF: predicated region fallthrough
CT: control target
= control target key end

     0   :  { %10 = vsyncpa [#allocation3], 0  ;;  %s1054_s0 = inlined_call_operand.vmem [shape: f32[8,784], index: 0, kind: input, shape index: {}]   ;;  %s1055_s1 = inlined_call_operand.hbm [shape: f32[784,128], index: 1, kind: input, shape index: {}]   ;;  %s1056_s2 = inlined_call_operand.vmem [shape: f32[1,128], index: 2, kind: input, shape index: {}]   ;;  %s1057_s3 = inlined_call_operand.vmem [shape: f32[128,10], index: 3, kind: input, shape index: {}]   ;;  %s1058_s4 = inlined_call_operand.vmem [shape: f32[1,10], index: 4, kind: input, shape index: {}]   ;;  %s1059_s5 = inlined_call_operand.hbm [shape: f32[8,10], index: 5, kind: output, shape index: {}]  }
   0x1   :  { %11 = vsyncpa [#allocation4], 0  ;;  %s906_s18 = smov [#allocation2]   ;;  %s858_s22 = scalar_lea.hbm %s1055_s1, 12544 }
   0x2   :  { %s19_s19 = sshll.u32 %s906_s18, 4  ;;  %p859_p0 = scmp.ne.s32.totalorder %s1055_s1, %s858_s22  ;;  %s20_s19 = int_to_ptr.vmem [resolvable:$true] %s19_s19 }
   0x3   :  { %p862_p1 = scmp.lt.u32.totalorder %s858_s22, %s1055_s1 }
   0x5   :  { %p864_p2 = pnand %p862_p1, %p859_p0 }
   0x7   :  { %867 = shalt.err (!%p864_p2)
}
   0x8   :  { %s868_s27 = scalar_lea.vmem %s20_s19, 12544  ;;  %p873_p4 = scmp.lt.s32.totalorder %s20_s19, %s20_s19 }
   0x9   :  { %p869_p3 = scmp.ne.s32.totalorder %s20_s19, %s868_s27  ;;  %p874_p5 = scmp.lt.s32.totalorder %s868_s27, %s868_s27 }
   0xb   :  { %p875_p6 = por %p874_p5, %p873_p4 }
   0xd   :  { %p876_p7 = pnand %p875_p6, %p869_p3 }
   0xf   :  { %879 = shalt.err (!%p876_p7)
}
  0x10   :  { %s907_s28 = smov 128   ;;  %s908_s29 = smov 8  }
  0x11   :  { %25 = dma.hbm_to_vmem [thread:$0]  %s1055_s1, 12544, %s20_s19, [#allocation3], %s907_s28, %s907_s28, %s908_s29  }
  0x12   :  { %902 = dma.done.wait [#allocation3], 12544  }
  0x13   :  { %903 = vsyncadd [#allocation3], 4294954752  ;;  %v58_v0 = vld [vmem:[#allocation2 + $0x80] sm:$0xff]  ;;  %v59_v1 = vld [vmem:[#allocation2 + $0x88] sm:$0xff]  ;;  %vm910_vm0 = vmmov 0   ;;  %vm163_vm1 = vcmask 130048  }
  0x14   :  { %v42_v2 = vld [vmem:[#allocation2] sm:$0xff]  ;;  %v724_v3 = vpack.c.bf16 %v59_v1, %v58_v0  ;;  %v43_v4 = vld [vmem:[#allocation2 + $0x8] sm:$0xff]  ;;  %v60_v11 = vld [vmem:[#allocation2 + $0x90] sm:$0xff]  ;;  %vm525_vm2 = vcmask 80896  }
  0x15   :  { %v90_v5 = vld [vmem:[#allocation2 + $0x180] sm:$0xff]  ;;  %v91_v6 = vld [vmem:[#allocation2 + $0x188] sm:$0xff]  ;;  %v726_v7 = vpack.c.bf16 %v43_v4, %v42_v2  ;;  %v61_v13 = vld [vmem:[#allocation2 + $0x98] sm:$0xff] }
  0x16   :  { %v756_v8 = vpack.c.bf16 %v91_v6, %v90_v5  ;;  %v74_v9 = vld [vmem:[#allocation2 + $0x100] sm:$0xff]  ;;  %v75_v10 = vld [vmem:[#allocation2 + $0x108] sm:$0xff]  ;;  %725 = vmatprep.subr.bf16.mxu0 %v724_v3  ;;  %v44_v14 = vld [vmem:[#allocation2 + $0x10] sm:$0xff]  ;;  %v728_v16 = vpack.c.bf16 %v61_v13, %v60_v11 }
  0x17   :  { %v758_v12 = vpack.c.bf16 %v75_v10, %v74_v9  ;;  %v45_v15 = vld [vmem:[#allocation2 + $0x18] sm:$0xff]  ;;  %727 = vmatpush3.bf16.msra.mxu0 %v726_v7  ;;  %v92_v18 = vld [vmem:[#allocation2 + $0x190] sm:$0xff]  ;;  %v62_v23 = vld [vmem:[#allocation2 + $0xa0] sm:$0xff] }
  0x18   :  { %757 = vmatprep.subr.bf16.mxu1 %v756_v8  ;;  %v730_v17 = vpack.c.bf16 %v45_v15, %v44_v14  ;;  %v93_v19 = vld [vmem:[#allocation2 + $0x198] sm:$0xff]  ;;  %v76_v20 = vld [vmem:[#allocation2 + $0x110] sm:$0xff]  ;;  %v63_v24 = vld [vmem:[#allocation2 + $0xa8] sm:$0xff]  ;;  %729 = vmatprep.subr.bf16.mxu0 %v728_v16 }
  0x19   :  { %759 = vmatpush3.bf16.msra.mxu1 %v758_v12  ;;  %v760_v21 = vpack.c.bf16 %v93_v19, %v92_v18  ;;  %v77_v22 = vld [vmem:[#allocation2 + $0x118] sm:$0xff]  ;;  %v732_v26 = vpack.c.bf16 %v63_v24, %v62_v23  ;;  %v46_v27 = vld [vmem:[#allocation2 + $0x20] sm:$0xff]  ;;  %v47_v28 = vld [vmem:[#allocation2 + $0x28] sm:$0xff] }
  0x1a   :  { %v762_v25 = vpack.c.bf16 %v77_v22, %v76_v20  ;;  %v94_v29 = vld [vmem:[#allocation2 + $0x1a0] sm:$0xff]  ;;  %v95_v30 = vld [vmem:[#allocation2 + $0x1a8] sm:$0xff]  ;;  %v734_v33 = vpack.c.bf16 %v47_v28, %v46_v27  ;;  %v64_v35 = vld [vmem:[#allocation2 + $0xb0] sm:$0xff] }
  0x1b   :  { %761 = vmatprep.subr.bf16.mxu1 %v760_v21  ;;  %v78_v31 = vld [vmem:[#allocation2 + $0x120] sm:$0xff]  ;;  %v79_v32 = vld [vmem:[#allocation2 + $0x128] sm:$0xff]  ;;  %731 = vmatpush3.bf16.msra.mxu0 %v730_v17  ;;  %v764_v34 = vpack.c.bf16 %v95_v30, %v94_v29  ;;  %v65_v36 = vld [vmem:[#allocation2 + $0xb8] sm:$0xff] }
  0x1c   :  { %v48_v37 = vld [vmem:[#allocation2 + $0x30] sm:$0xff]  ;;  %733 = vmatprep.subr.bf16.mxu0 %v732_v26  ;;  %v766_v38 = vpack.c.bf16 %v79_v32, %v78_v31  ;;  %v736_v39 = vpack.c.bf16 %v65_v36, %v64_v35  ;;  %v49_v40 = vld [vmem:[#allocation2 + $0x38] sm:$0xff]  ;;  %v66_v46 = vld [vmem:[#allocation2 + $0xc0] sm:$0xff] }
  0x1d   :  { %763 = vmatpush3.bf16.msra.mxu1 %v762_v25  ;;  %v96_v41 = vld [vmem:[#allocation2 + $0x1b0] sm:$0xff]  ;;  %v97_v42 = vld [vmem:[#allocation2 + $0x1b8] sm:$0xff]  ;;  %v67_v47 = vld [vmem:[#allocation2 + $0xc8] sm:$0xff]  ;;  %v738_v48 = vpack.c.bf16 %v49_v40, %v48_v37 }
  0x1e   :  { %765 = vmatprep.subr.bf16.mxu1 %v764_v34  ;;  %v768_v43 = vpack.c.bf16 %v97_v42, %v96_v41  ;;  %v80_v44 = vld [vmem:[#allocation2 + $0x130] sm:$0xff]  ;;  %v81_v45 = vld [vmem:[#allocation2 + $0x138] sm:$0xff]  ;;  %v98_v49 = vld [vmem:[#allocation2 + $0x1c0] sm:$0xff]  ;;  %v740_v52 = vpack.c.bf16 %v67_v47, %v66_v46 }
  0x1f   :  { %735 = vmatpush3.bf16.msra.mxu0 %v734_v33  ;;  %v99_v50 = vld [vmem:[#allocation2 + $0x1c8] sm:$0xff]  ;;  %v770_v51 = vpack.c.bf16 %v81_v45, %v80_v44  ;;  %v50_v53 = vld [vmem:[#allocation2 + $0x40] sm:$0xff]  ;;  %v68_v58 = vld [vmem:[#allocation2 + $0xd0] sm:$0xff] }
  0x20   :  { %737 = vmatprep.subr.bf16.mxu0 %v736_v39  ;;  %v51_v54 = vld [vmem:[#allocation2 + $0x48] sm:$0xff]  ;;  %v82_v55 = vld [vmem:[#allocation2 + $0x140] sm:$0xff]  ;;  %v772_v56 = vpack.c.bf16 %v99_v50, %v98_v49  ;;  %v69_v59 = vld [vmem:[#allocation2 + $0xd8] sm:$0xff]  ;;  %v909_v50 = vmov 0.0|0.0  }
  0x21   :  { %767 = vmatpush3.bf16.msra.mxu1 %v766_v38  ;;  %v83_v57 = vld [vmem:[#allocation2 + $0x148] sm:$0xff]  ;;  %v100_v60 = vld [vmem:[#allocation2 + $0x1d0] sm:$0xff]  ;;  %v101_v61 = vld [vmem:[#allocation2 + $0x1d8] sm:$0xff]  ;;  %v742_v62 = vpack.c.bf16 %v51_v54, %v50_v53  ;;  %v744_v0 = vpack.c.bf16 %v69_v59, %v68_v58 }
  0x22   :  { %769 = vmatprep.subr.bf16.mxu1 %v768_v43  ;;  %v774_v63 = vpack.c.bf16 %v83_v57, %v82_v55  ;;  %v52_v1 = vld [vmem:[#allocation2 + $0x50] sm:$0xff]  ;;  %v53_v2 = vld [vmem:[#allocation2 + $0x58] sm:$0xff]  ;;  %v776_v4 = vpack.c.bf16 %v101_v61, %v100_v60  ;;  %v70_v6 = vld [vmem:[#allocation2 + $0xe0] sm:$0xff]  ;;  %v911_v60 = vmov 0.0  }
  0x23   :  { %739 = vmatpush3.bf16.msra.mxu0 %v738_v48  ;;  %v84_v3 = vld [vmem:[#allocation2 + $0x150] sm:$0xff]  ;;  %v85_v5 = vld [vmem:[#allocation2 + $0x158] sm:$0xff]  ;;  %v71_v7 = vld [vmem:[#allocation2 + $0xe8] sm:$0xff]  ;;  %v746_v10 = vpack.c.bf16 %v53_v2, %v52_v1 }
  0x24   :  { %741 = vmatprep.subr.bf16.mxu0 %v740_v52  ;;  %v102_v8 = vld [vmem:[#allocation2 + $0x1e0] sm:$0xff]  ;;  %v103_v9 = vld [vmem:[#allocation2 + $0x1e8] sm:$0xff]  ;;  %v778_v13 = vpack.c.bf16 %v85_v5, %v84_v3  ;;  %v748_v14 = vpack.c.bf16 %v71_v7, %v70_v6  ;;  %v72_v19 = vld [vmem:[#allocation2 + $0xf0] sm:$0xff] }
  0x25   :  { %771 = vmatpush3.bf16.msra.mxu1 %v770_v51  ;;  %v54_v11 = vld [vmem:[#allocation2 + $0x60] sm:$0xff]  ;;  %v36_v12 = vld [vmem:[%s1054_s0 + $0x8] sm:$0xff]  ;;  %v780_v18 = vpack.c.bf16 %v103_v9, %v102_v8  ;;  %v73_v20 = vld [vmem:[#allocation2 + $0xf8] sm:$0xff] }
  0x26   :  { %773 = vmatprep.subr.bf16.mxu1 %v772_v56  ;;  %v55_v15 = vld [vmem:[#allocation2 + $0x68] sm:$0xff]  ;;  %v86_v16 = vld [vmem:[#allocation2 + $0x160] sm:$0xff]  ;;  %231 = vmatprep.mubr.f32.mxu0 %v36_v12  ;;  %v38_v21 = vld [vmem:[%s1054_s0 + $0x18] sm:$0xff]  ;;  %v752_v26 = vpack.c.bf16 %v73_v20, %v72_v19 }
  0x27   :  { %743 = vmatpush3.bf16.msra.mxu0 %v742_v62  ;;  %v87_v17 = vld [vmem:[#allocation2 + $0x168] sm:$0xff]  ;;  %v104_v22 = vld [vmem:[#allocation2 + $0x1f0] sm:$0xff]  ;;  %v105_v23 = vld [vmem:[#allocation2 + $0x1f8] sm:$0xff]  ;;  %301 = vmatprep.mubr.f32.mxu1 %v38_v21  ;;  %v750_v24 = vpack.c.bf16 %v55_v15, %v54_v11 }
  0x28   :  { %745 = vmatprep.subr.bf16.mxu0 %v744_v0  ;;  %v782_v25 = vpack.c.bf16 %v87_v17, %v86_v16  ;;  %v56_v27 = vld [vmem:[#allocation2 + $0x70] sm:$0xff]  ;;  %v57_v28 = vld [vmem:[#allocation2 + $0x78] sm:$0xff]  ;;  %v784_v30 = vpack.c.bf16 %v105_v23, %v104_v22  ;;  %v122_v32 = vld [vmem:[#allocation2 + $0x280] sm:$0xff] }
  0x29   :  { %775 = vmatpush3.bf16.msra.mxu1 %v774_v63  ;;  %v88_v29 = vld [vmem:[#allocation2 + $0x170] sm:$0xff]  ;;  %v89_v31 = vld [vmem:[#allocation2 + $0x178] sm:$0xff]  ;;  %v123_v33 = vld [vmem:[#allocation2 + $0x288] sm:$0xff]  ;;  %v754_v34 = vpack.c.bf16 %v57_v28, %v56_v27 }
  0x2a   :  { %777 = vmatprep.subr.bf16.mxu1 %v776_v4  ;;  %v786_v35 = vpack.c.bf16 %v89_v31, %v88_v29  ;;  %v788_v36 = vpack.c.bf16 %v123_v33, %v122_v32  ;;  %v106_v37 = vld [vmem:[#allocation2 + $0x200] sm:$0xff]  ;;  %v107_v38 = vld [vmem:[#allocation2 + $0x208] sm:$0xff]  ;;  %v124_v39 = vld [vmem:[#allocation2 + $0x290] sm:$0xff] }
  0x2b   :  { %747 = vmatpush3.bf16.msra.mxu0 %v746_v10  ;;  %v125_v40 = vld [vmem:[#allocation2 + $0x298] sm:$0xff]  ;;  %v35_v41 = vld [vmem:[%s1054_s0] sm:$0xff]  ;;  %v790_v42 = vpack.c.bf16 %v107_v38, %v106_v37  ;;  %v37_v43 = vld [vmem:[%s1054_s0 + $0x10] sm:$0xff] }
  0x2c   :  { %749 = vmatprep.subr.bf16.mxu0 %v748_v14  ;;  %v108_v44 = vld [vmem:[#allocation2 + $0x210] sm:$0xff]  ;;  %v792_v45 = vpack.c.bf16 %v125_v40, %v124_v39  ;;  %v109_v46 = vld [vmem:[#allocation2 + $0x218] sm:$0xff]  ;;  %v126_v47 = vld [vmem:[#allocation2 + $0x2a0] sm:$0xff] }
  0x2d   :  { %779 = vmatpush3.bf16.msra.mxu1 %v778_v13  ;;  %v127_v48 = vld [vmem:[#allocation2 + $0x2a8] sm:$0xff]  ;;  %v138_v51 = vld [vmem:[#allocation2 + $0x300] sm:$0xff]  ;;  %v794_v54 = vpack.c.bf16 %v109_v46, %v108_v44  ;;  %v128_v58 = vld [vmem:[#allocation2 + $0x2b0] sm:$0xff] }
  0x2e   :  { %781 = vmatprep.subr.bf16.mxu1 %v780_v18  ;;  %v40_v49 = vld [vmem:[%s1054_s0 + $0x28] sm:$0xff]  ;;  %v796_v55 = vpack.c.bf16 %v127_v48, %v126_v47  ;;  %v110_v56 = vld [vmem:[#allocation2 + $0x220] sm:$0xff]  ;;  %v129_v59 = vld [vmem:[#allocation2 + $0x2b8] sm:$0xff] }
  0x2f   :  { %751 = vmatpush3.bf16.msra.mxu0 %v750_v24  ;;  %v139_v52 = vld [vmem:[#allocation2 + $0x308] sm:$0xff]  ;;  %v41_v61 = vld [vmem:[%s1054_s0 + $0x30] sm:$0xff]  ;;  %v800_v63 = vpack.c.bf16 %v129_v59, %v128_v58  ;;  %v113_v1 = vld [vmem:[#allocation2 + $0x238] sm:$0xff] }
  0x30   :  { %753 = vmatprep.subr.bf16.mxu0 %v752_v26  ;;  %v821_v53 = vpack.c.bf16 %v139_v52, %v138_v51  ;;  %v111_v57 = vld [vmem:[#allocation2 + $0x228] sm:$0xff]  ;;  %v112_v0 = vld [vmem:[#allocation2 + $0x230] sm:$0xff]  ;;  %v130_v2 = vld [vmem:[#allocation2 + $0x2c0] sm:$0xff] }
  0x31   :  { %783 = vmatpush3.bf16.msra.mxu1 %v782_v25  ;;  %v798_v62 = vpack.c.bf16 %v111_v57, %v110_v56  ;;  %v131_v3 = vld [vmem:[#allocation2 + $0x2c8] sm:$0xff]  ;;  %v802_v4 = vpack.c.bf16 %v113_v1, %v112_v0  ;;  %v114_v6 = vld [vmem:[#allocation2 + $0x240] sm:$0xff]  ;;  %v132_v8 = vld [vmem:[#allocation2 + $0x2d0] sm:$0xff] }
  0x32   :  { %785 = vmatprep.subr.bf16.mxu1 %v784_v30  ;;  %v804_v5 = vpack.c.bf16 %v131_v3, %v130_v2  ;;  %v115_v7 = vld [vmem:[#allocation2 + $0x248] sm:$0xff]  ;;  %v133_v9 = vld [vmem:[#allocation2 + $0x2d8] sm:$0xff]  ;;  %v116_v12 = vld [vmem:[#allocation2 + $0x250] sm:$0xff] }
  0x33   :  { %755 = vmatpush3.bf16.msra.mxu0 %v754_v34  ;;  %v806_v10 = vpack.c.bf16 %v115_v7, %v114_v6  ;;  %v808_v11 = vpack.c.bf16 %v133_v9, %v132_v8  ;;  %v117_v13 = vld [vmem:[#allocation2 + $0x258] sm:$0xff]  ;;  %v134_v14 = vld [vmem:[#allocation2 + $0x2e0] sm:$0xff]  ;;  %v135_v15 = vld [vmem:[#allocation2 + $0x2e8] sm:$0xff] }
  0x34   :  { %789 = vmatprep.subr.bf16.mxu0 %v788_v36  ;;  %v810_v16 = vpack.c.bf16 %v117_v13, %v116_v12  ;;  %v812_v17 = vpack.c.bf16 %v135_v15, %v134_v14  ;;  %v118_v18 = vld [vmem:[#allocation2 + $0x260] sm:$0xff]  ;;  %v119_v19 = vld [vmem:[#allocation2 + $0x268] sm:$0xff]  ;;  %v136_v20 = vld [vmem:[#allocation2 + $0x2f0] sm:$0xff] }
  0x35   :  { %787 = vmatpush3.bf16.msra.mxu1 %v786_v35  ;;  %v137_v21 = vld [vmem:[#allocation2 + $0x2f8] sm:$0xff]  ;;  %v814_v22 = vpack.c.bf16 %v119_v19, %v118_v18  ;;  %v120_v24 = vld [vmem:[#allocation2 + $0x270] sm:$0xff]  ;;  %v39_v27 = vld [vmem:[%s1054_s0 + $0x20] sm:$0xff] }
  0x36   :  { %820 = vmatprep.subr.bf16.mxu1 %v909_v50  ;;  %232 = vmatmul.mubr.f32.vlgmr.msra.gmra.mrb[0].mxu0 %v35_v41  ;;  %v816_v23 = vpack.c.bf16 %v137_v21, %v136_v20  ;;  %v121_v25 = vld [vmem:[#allocation2 + $0x278] sm:$0xff]  ;;  %v140_v28 = vld [vmem:[%s1057_s3] sm:$0xff]  ;;  %v141_v29 = vld [vmem:[%s1057_s3 + $0x8] sm:$0xff] }
  0x37   :  { %791 = vmatpush3.bf16.msra.mxu0 %v790_v42  ;;  %371 = vmatprep.mubr.f32.mxu0 %v40_v49  ;;  %v818_v26 = vpack.c.bf16 %v121_v25, %v120_v24  ;;  %v142_v30 = vld [vmem:[%s1057_s3 + $0x10] sm:$0xff]  ;;  %v824_v31 = vpack.c.bf16 %v141_v29, %v140_v28  ;;  %v143_v32 = vld [vmem:[%s1057_s3 + $0x18] sm:$0xff]  ;;  %v144_v34 = vld [vmem:[%s1057_s3 + $0x20] sm:$0xff] }
  0x38   :  { %302 = vmatmul.mubr.f32.vlgmr.msra.gmra.mrb[0].mxu1 %v37_v43  ;;  %793 = vmatprep.subr.bf16.mxu0 %v792_v45  ;;  %v827_v33 = vpack.c.bf16 %v143_v32, %v142_v30  ;;  %v145_v35 = vld [vmem:[%s1057_s3 + $0x28] sm:$0xff]  ;;  %v146_v37 = vld [vmem:[%s1057_s3 + $0x30] sm:$0xff]  ;;  %v147_v38 = vld [vmem:[%s1057_s3 + $0x38] sm:$0xff] }
  0x39   :  { %822 = vmatpush3.bf16.msra.mxu1 %v821_v53  ;;  %686 = vmatprep.mubr.msk.f32.mxu1 %vm910_vm0, %v911_v60  ;;  %v830_v36 = vpack.c.bf16 %v145_v35, %v144_v34  ;;  %v833_v39 = vpack.c.bf16 %v147_v38, %v146_v37  ;;  %v148_v40 = vld [vmem:[%s1057_s3 + $0x40] sm:$0xff]  ;;  %v149_v41 = vld [vmem:[%s1057_s3 + $0x48] sm:$0xff]  ;;  %v150_v43 = vld [vmem:[%s1057_s3 + $0x50] sm:$0xff] }
  0x3a   :  { %823 = vmatprep.subr.bf16.mxu1 %v909_v50  ;;  %v836_v42 = vpack.c.bf16 %v149_v41, %v148_v40  ;;  %v151_v44 = vld [vmem:[%s1057_s3 + $0x58] sm:$0xff]  ;;  %v152_v46 = vld [vmem:[%s1057_s3 + $0x60] sm:$0xff]  ;;  %v153_v47 = vld [vmem:[%s1057_s3 + $0x68] sm:$0xff] }
  0x3b   :  { %795 = vmatpush3.bf16.msra.mxu0 %v794_v54  ;;  %v839_v45 = vpack.c.bf16 %v151_v44, %v150_v43  ;;  %v842_v48 = vpack.c.bf16 %v153_v47, %v152_v46  ;;  %v154_v49 = vld [vmem:[%s1057_s3 + $0x70] sm:$0xff]  ;;  %v155_v51 = vld [vmem:[%s1057_s3 + $0x78] sm:$0xff]  ;;  %v554_v54 = vld [vmem:[%s1056_s2] ss:$0 sm:$0xff]  ;;  %s912_s2 = smov [#allocation5]  }
  0x3c   :  { %797 = vmatprep.subr.bf16.mxu0 %v796_v55  ;;  %687 = vmatmul.mubr.msk.f32.vlgmr.msra.gmra.mrb[2].mxu1 %vm163_vm1, %v41_v61  ;;  %v845_v52 = vpack.c.bf16 %v155_v51, %v154_v49 }
  0x3d   :  { %721 = vmatprep.mubr.msk.f32.mxu1 %vm910_vm0, %v911_v60  ;;  %825 = vmatpush3.bf16.msra.mxu1 %v824_v31 }
  0x3e   :  { %826 = vmatprep.subr.bf16.mxu1 %v909_v50 }
  0x3f   :  { %799 = vmatpush3.bf16.msra.mxu0 %v798_v62 }
  0x40   :  { %801 = vmatprep.subr.bf16.mxu0 %v800_v63 }
  0x41   :  { %828 = vmatpush3.bf16.msra.mxu1 %v827_v33 }
  0x42   :  { %829 = vmatprep.subr.bf16.mxu1 %v909_v50 }
  0x43   :  { %803 = vmatpush3.bf16.msra.mxu0 %v802_v4 }
  0x44   :  { %805 = vmatprep.subr.bf16.mxu0 %v804_v5  ;;  %v556_v5 = vld [vmem:[%s1058_s4] ss:$0 sm:$0xff]  ;;  %s545_s4 = sshll.u32 %s912_s2, 4  ;;  %s546_s4 = int_to_ptr.vmem [resolvable:$true] %s545_s4 }
  0x45   :  { %831 = vmatpush3.bf16.msra.mxu1 %v830_v36  ;;  %s880_s0 = scalar_lea.vmem %s546_s4, 128  ;;  %p885_p9 = scmp.lt.s32.totalorder %s546_s4, %s546_s4 }
  0x46   :  { %832 = vmatprep.subr.bf16.mxu1 %v909_v50  ;;  %p881_p8 = scmp.ne.s32.totalorder %s546_s4, %s880_s0  ;;  %p886_p10 = scmp.lt.s32.totalorder %s880_s0, %s880_s0 }
  0x47   :  { %807 = vmatpush3.bf16.msra.mxu0 %v806_v10 }
  0x48   :  { %809 = vmatprep.subr.bf16.mxu0 %v808_v11  ;;  %p887_p11 = por %p886_p10, %p885_p9 }
  0x49   :  { %834 = vmatpush3.bf16.msra.mxu1 %v833_v39 }
  0x4a   :  { %835 = vmatprep.subr.bf16.mxu1 %v909_v50  ;;  %p888_p12 = pnand %p887_p11, %p881_p8 }
  0x4b   :  { %811 = vmatpush3.bf16.msra.mxu0 %v810_v16 }
  0x4c   :  { %813 = vmatprep.subr.bf16.mxu0 %v812_v17 }
  0x4d   :  { %837 = vmatpush3.bf16.msra.mxu1 %v836_v42 }
  0x4e   :  { %838 = vmatprep.subr.bf16.mxu1 %v909_v50 }
  0x4f   :  { %815 = vmatpush3.bf16.msra.mxu0 %v814_v22 }
  0x50   :  { %817 = vmatprep.subr.bf16.mxu0 %v816_v23 }
  0x51   :  { %840 = vmatpush3.bf16.msra.mxu1 %v839_v45 }
  0x52   :  { %841 = vmatprep.subr.bf16.mxu1 %v909_v50 }
  0x53   :  { %819 = vmatpush3.bf16.msra.mxu0 %v818_v26 }
  0x55   :  { %843 = vmatpush3.bf16.msra.mxu1 %v842_v48 }
  0x56   :  { %372 = vmatmul.mubr.f32.vlgmr.msra.gmra.mrb[2].mxu0 %v39_v27  ;;  %844 = vmatprep.subr.bf16.mxu1 %v909_v50 }
  0x59   :  { %846 = vmatpush3.bf16.msra.mxu1 %v845_v52 }
 0x109   :  { %v589_v53 = vpop.f32.mrb[0].mxu0 }
 0x10a   :  { %v590_v55 = vpop.f32.mrb[1].mxu0 }
 0x10b   :  { %v624_v56 = vpop.f32.mrb[0].mxu1  ;;  %v591_v57 = vadd.f32 %v590_v55, %v589_v53 }
 0x10c   :  { %v625_v58 = vpop.f32.mrb[1].mxu1 }
 0x10d   :  { %v626_v50 = vadd.f32 %v625_v58, %v624_v56  ;;  %v234_v59 = vadd.f32 %v591_v57, %v554_v54 }
 0x10f   :  { %v304_v60 = vadd.f32 %v626_v50, %v234_v59  ;;  %v443_v61 = vpop.f32.mrb[2].mxu1 }
 0x110   :  { %v688_v62 = vpop.f32.mrb[3].mxu1 }
 0x129   :  { %v659_v63 = vpop.f32.mrb[2].mxu0 }
 0x12a   :  { %v660_v0 = vpop.f32.mrb[3].mxu0 }
 0x12b   :  { %v661_v1 = vadd.f32 %v660_v0, %v659_v63 }
 0x12d   :  { %v374_v2 = vadd.f32 %v661_v1, %v304_v60 }
 0x12f   :  { %v444_v3 = vadd.f32 %v443_v61, %v374_v2 }
 0x131   :  { %v447_v4 = vmax.f32 %v444_v3, 0.0 }
 0x133   :  { %722 = vmatmul.mubr.f32.vlgmr.msra.gmra.mrb[4].mxu1 %v447_v4 }
 0x206   :  { %v521_v6 = vpop.f32.mrb[4].mxu1 }
 0x207   :  { %v522_v7 = vadd.f32 %v556_v5, %v521_v6  ;;  %v723_v8 = vpop.f32.mrb[5].mxu1 }
 0x209   :  { %v526_v9 = vsel %vm525_vm2, %v522_v7, -inf }
 0x20a   :  { %527 = vmax.xlane.f32.xlu0 %v526_v9 }
 0x297   :  { %v528_v10 = vpop.xlane.xlu0 %527 }
 0x298   :  { %v529_v11 = vsub.f32 %v522_v7, %v528_v10 }
 0x29a   :  { %v530_v12 = vmul.f32 1.442695, %v529_v11 }
 0x29c   :  { %854 = vpow2.f32 %v530_v12 }
 0x2a6   :  { %v855_v13 = vpop.eup %854 }
 0x2a7   :  { %v532_v14 = vsel %vm525_vm2, %v855_v13, 0.0 }
 0x2a8   :  { %533 = vadd.xlane.f32.xlu0 %v532_v14 }
 0x335   :  { %v534_v15 = vpop.xlane.xlu0 %533 }
 0x336   :  { %856 = vlog2.f32 %v534_v15 }
 0x340   :  { %v857_v16 = vpop.eup %856 }
 0x341   :  { %v536_v17 = vmul.f32 0.6931472, %v857_v16 }
 0x343   :  { %v537_v18 = vsub.f32 %v529_v11, %v536_v17 }
 0x345   :  { %538 = vst.msk [vmem:[#allocation5] sm:$0xff] %vm525_vm2, %v537_v18 }
 0x346   :  { %891 = shalt.err (!%p888_p12)
}
 0x347   :  { %s892_s30 = scalar_lea.hbm %s1059_s5, 128 }
 0x348   :  { %p893_p13 = scmp.ne.s32.totalorder %s1059_s5, %s892_s30  ;;  %p896_p0 = scmp.lt.u32.totalorder %s892_s30, %s1059_s5 }
 0x34a   :  { %p898_p1 = pnand %p896_p0, %p893_p13 }
 0x34c   :  { %901 = shalt.err (!%p898_p1)
}
 0x34d   :  { %548 = dma.vmem_to_hbm [thread:$0]  %s546_s4, 128, %s1059_s5, [#allocation4]  }
 0x34e   :  { %904 = dma.done.wait [#allocation4], 128  }
 0x34f   :  { %905 = vsyncadd [#allocation4], 4294967168 }
 0x350   :  { %552 = vsyncpa [#allocation3], 1 }
 0x351   :  { %553 = vsyncpa [#allocation4], 1 }

</bundles_post_ra>
